<compile_context>
chip_gen: v6e
topology: v6e:2x2x1
jax: 0.10.0
libtpu: 0.0.40
codegen_flags: <defaults>
</compile_context>

<pallas_src>
import math

import jax
import jax.numpy as jnp
import numpy as np
from jax.experimental import pallas as pl
from jax.experimental.pallas import tpu as pltpu

# ---------------- model config (small, consistent with the module) -----------
B = 2           # batch
S = 8           # seq_len
H = 4           # n_heads (== n_kv_heads, see faithfulness note)
D = 8           # head_dim
E = H * D       # n_emb = 32
HD = H * D      # n_heads * head_dim = 32
BS = B * S      # rows after folding batch into the sublane axis


# ---------------------------- Pallas kernel ----------------------------------
def self_attention_kernel(x_ref, w_ref, bias_ref, cos_ref, sin_ref, o_ref):
    """Single-shot MHA forward.

    x_ref    : (BS, E)          activations, batch folded into rows
    w_ref    : (E, 4*HD + H*E)  [Wq' | Wk | Wq'@P | Wk@P | Wvo]   (' = pre-scaled 1/sqrt(D),
                                 P = RoPE pair-swap, Wvo = per-head Wv@Wo fold)
    bias_ref : (H*BS, BS)       block-diagonal -1e30 bias, pre-tiled across heads
    cos_ref  : (BS, HD)         interleave-expanded cos table (per row / position)
    sin_ref  : (BS, HD)         interleave-expanded sin table
    o_ref    : (BS, E)
    """
    x = x_ref[...]
    w = w_ref[...]
    bias = bias_ref[...]
    cos = cos_ref[...]
    sin = sin_ref[...]

    # One fused MXU pass: q | k | q_rot | k_rot | (v @ Wo per head)
    proj = jnp.dot(x, w, preferred_element_type=jnp.float32)          # (BS, 4*HD + H*E)

    # RoPE is pure VPU work: rope(q) = q*cos + (q@P)*sin, with q@P == x@(Wq P).
    q = proj[:, 0 * HD:1 * HD] * cos + proj[:, 2 * HD:3 * HD] * sin   # (BS, HD), pre-scaled
    k = proj[:, 1 * HD:2 * HD] * cos + proj[:, 3 * HD:4 * HD] * sin   # (BS, HD)
    vproj = proj[:, 4 * HD:]                                          # (BS, H*E) = x @ Wvo

    # One up-front transpose; per-head K slices are then sublane-aligned 8-row slices.
    kT = k.T                                                          # (HD, BS)

    # Per-head scores, stacked along sublanes so the softmax runs once on full tiles.
    scores = [
        jnp.dot(q[:, h * D:(h + 1) * D], kT[h * D:(h + 1) * D, :],
                preferred_element_type=jnp.float32)                   # (BS, BS)
        for h in range(H)
    ]
    s_all = jnp.concatenate(scores, axis=0) + bias                    # (H*BS, BS)

    # Scores are O(1) (scale folded into Wq) -> no row-max subtraction needed;
    # exp(-1e30) underflows to exactly 0 for the cross-batch masked entries.
    p_all = jnp.exp(s_all)
    p_all = p_all * pl.reciprocal(jnp.sum(p_all, axis=-1, keepdims=True), approx=False)

    # Output: acc = sum_h p_h @ (v_h @ Wo_h) — Wo already folded into vproj on the host.
    acc = jnp.zeros((BS, E), jnp.float32)
    for h in range(H):
        p_h = p_all[h * BS:(h + 1) * BS, :]                           # sublane-aligned slice
        acc = acc + jnp.dot(p_h, vproj[:, h * E:(h + 1) * E],
                            preferred_element_type=jnp.float32)       # (BS, E)

    # NOTE: last dim is E=32 (<128 lanes) -> masked store; a lane-dense relayout would
    # cost more than the two masked vst it saves at this toy size.
    o_ref[...] = acc


def self_attention_pallas(x, w_all, bias_stacked, cos_bs, sin_bs):
    b, s, e = x.shape
    x2d = x.reshape(b * s, e)                   # fold batch into sublanes (free outside)
    out2d = pl.pallas_call(
        self_attention_kernel,
        out_shape=jax.ShapeDtypeStruct((b * s, e), jnp.float32),
        compiler_params=pltpu.CompilerParams(
            # Tiny working set (~35 KB); conservative scoped-VMEM bound valid on every
            # generation (v7x has only 64 MiB physical VMEM per core).
            vmem_limit_bytes=16 * 1024 * 1024),
    )(x2d, w_all, bias_stacked, cos_bs, sin_bs)
    return out2d.reshape(b, s, e)


# -------------------------- plain-JAX reference -------------------------------
def rope_ref(t, cos, sin):
    # t: (B, S, H, D); cos/sin: (S, D//2); interleaved pairs
    tr = t.reshape(B, S, H, D // 2, 2)
    t0, t1 = tr[..., 0], tr[..., 1]
    c = cos[None, :, None, :]
    s = sin[None, :, None, :]
    o0 = t0 * c - t1 * s
    o1 = t0 * s + t1 * c
    return jnp.stack([o0, o1], axis=-1).reshape(B, S, H, D)


def self_attention_ref(x, wq, wk, wv, wo, cos, sin):
    q = (x @ wq).reshape(B, S, H, D)
    k = (x @ wk).reshape(B, S, H, D)
    v = (x @ wv).reshape(B, S, H, D)
    q = rope_ref(q, cos, sin)
    k = rope_ref(k, cos, sin)
    q = q.transpose(0, 2, 1, 3)        # (B,H,S,D)
    k = k.transpose(0, 2, 1, 3)
    v = v.transpose(0, 2, 1, 3)
    scores = (q @ k.transpose(0, 1, 3, 2)) / math.sqrt(D)
    p = jax.nn.softmax(scores, axis=-1)
    o = p @ v                          # (B,H,S,D)
    o = o.transpose(0, 2, 1, 3).reshape(B, S, HD)
    return o @ wo


# ------------------------------ main ------------------------------------------
if __name__ == "__main__":
    key = jax.random.PRNGKey(0)
    kx, kq, kk, kv, ko = jax.random.split(key, 5)

    x = jax.random.normal(kx, (B, S, E), dtype=jnp.float32)

    # Deterministic parameter init (PyTorch Linear stores (out,in); we use (in,out)).
    wq = jax.random.normal(kq, (E, HD), dtype=jnp.float32) * 0.02
    wk = jax.random.normal(kk, (E, HD), dtype=jnp.float32) * 0.02
    wv = jax.random.normal(kv, (E, HD), dtype=jnp.float32) * 0.02
    wo = jax.random.normal(ko, (HD, E), dtype=jnp.float32) * 0.02

    # frequency_complex for positions [0, S) (start_pos = 0):
    #   theta_i = 10000^(-2i/D), angle[s, i] = s * theta_i
    inv_freq = 1.0 / (10000.0 ** (jnp.arange(0, D, 2, dtype=jnp.float32) / D))  # (D/2,)
    pos = jnp.arange(S, dtype=jnp.float32)
    angles = pos[:, None] * inv_freq[None, :]        # (S, D/2)
    cos = jnp.cos(angles)
    sin = jnp.sin(angles)

    # Interleave-expand cos/sin to (S, D), tile across heads -> (S, HD),
    # then tile across batch rows -> (B*S, HD) (row r is batch r//S, position r%S).
    cos_bs = jnp.tile(jnp.tile(jnp.repeat(cos, 2, axis=-1), (1, H)), (B, 1))
    sin_bs = jnp.tile(jnp.tile(jnp.repeat(sin, 2, axis=-1), (1, H)), (B, 1))

    # Host-side fold of the RoPE pair-swap matrix P into the projection weights:
    #   (x @ Wq) @ P == x @ (Wq @ P), and Wq @ P is an exact signed column permutation:
    #     column 2i   of Wq@P = -Wq[:, 2i+1]    (feeds out[2i]   = q[2i]*cos - q[2i+1]*sin)
    #     column 2i+1 of Wq@P = +Wq[:, 2i]      (feeds out[2i+1] = q[2i+1]*cos + q[2i]*sin)
    src = np.arange(HD).reshape(H, D // 2, 2)[..., ::-1].reshape(HD)   # swap pair partners
    sgn = np.tile(np.array([-1.0, 1.0], dtype=np.float32), HD // 2)
    src = jnp.asarray(src)
    sgn = jnp.asarray(sgn)

    wq_rot = wq[:, src] * sgn[None, :]
    wk_rot = wk[:, src] * sgn[None, :]

    # Host-side Wv.Wo fold: (p_h @ v_h) @ Wo_h == p_h @ (x @ (Wv_h @ Wo_h)).
    wvo = jnp.concatenate(
        [wv[:, h * D:(h + 1) * D] @ wo[h * D:(h + 1) * D, :] for h in range(H)],
        axis=1)                                                        # (E, H*E)

    # Fused projection weight: one matmul produces q | k | q_rot | k_rot | v@Wo.
    # 1/sqrt(head_dim) score scale folded into the Q blocks (done once at init time).
    scale = 1.0 / math.sqrt(D)
    w_all = jnp.concatenate(
        [wq * scale, wk, wq_rot * scale, wk_rot, wvo], axis=1)         # (E, 4*HD + H*E)

    # Block-diagonal bias (rows only attend within their own batch element),
    # pre-tiled across heads for the sublane-stacked softmax.
    rb = np.arange(BS)[:, None] // S
    cb = np.arange(BS)[None, :] // S
    bias_np = np.where(rb == cb, 0.0, -1e30).astype(np.float32)        # (BS, BS)
    bias_stacked = jnp.asarray(np.tile(bias_np, (H, 1)))               # (H*BS, BS)

    out = self_attention_pallas(x, w_all, bias_stacked, cos_bs, sin_bs)
    out = jax.block_until_ready(out)

    ref = self_attention_ref(x, wq, wk, wv, wo, cos, sin)
    np.testing.assert_allclose(np.asarray(out), np.asarray(ref), rtol=1e-5, atol=1e-5)

    print("KERNEL_OK")
</pallas_src>

<mosaic_0001>
module attributes {stable_mosaic.version = 11 : i64} {
  func.func @self_attention_kernel(%arg0: memref<16x32xf32, #tpu.memory_space<vmem>>, %arg1: memref<32x256xf32, #tpu.memory_space<vmem>>, %arg2: memref<64x16xf32, #tpu.memory_space<vmem>>, %arg3: memref<16x32xf32, #tpu.memory_space<vmem>>, %arg4: memref<16x32xf32, #tpu.memory_space<vmem>>, %arg5: memref<16x32xf32, #tpu.memory_space<vmem>>) attributes {dimension_semantics = [], scalar_prefetch = 0 : i64, scratch_operands = 0 : i64, tpu.core_type = #tpu.core_type<tc>} {
    %c0 = arith.constant 0 : index
    %c0_0 = arith.constant 0 : index
    %0 = vector.load %arg0[%c0, %c0_0] : memref<16x32xf32, #tpu.memory_space<vmem>>, vector<16x32xf32>
    %c0_1 = arith.constant 0 : index
    %c0_2 = arith.constant 0 : index
    %1 = vector.load %arg1[%c0_1, %c0_2] : memref<32x256xf32, #tpu.memory_space<vmem>>, vector<32x256xf32>
    %c0_3 = arith.constant 0 : index
    %c0_4 = arith.constant 0 : index
    %2 = vector.load %arg2[%c0_3, %c0_4] : memref<64x16xf32, #tpu.memory_space<vmem>>, vector<64x16xf32>
    %c0_5 = arith.constant 0 : index
    %c0_6 = arith.constant 0 : index
    %3 = vector.load %arg3[%c0_5, %c0_6] : memref<16x32xf32, #tpu.memory_space<vmem>>, vector<16x32xf32>
    %c0_7 = arith.constant 0 : index
    %c0_8 = arith.constant 0 : index
    %4 = vector.load %arg4[%c0_7, %c0_8] : memref<16x32xf32, #tpu.memory_space<vmem>>, vector<16x32xf32>
    %cst = arith.constant dense<0.000000e+00> : vector<16x256xf32>
    %5 = tpu.matmul %0, %1, %cst {dimension_numbers = #tpu.dot_dimension_numbers<[1], [0], [0], [1], [0, 0, 1, 1], [], []>} : vector<16x32xf32>, vector<32x256xf32>, vector<16x256xf32> -> vector<16x256xf32>
    %6 = vector.extract_strided_slice %5 {offsets = [0, 0], sizes = [16, 32], strides = [1, 1]} : vector<16x256xf32> to vector<16x32xf32>
    %7 = arith.mulf %6, %3 : vector<16x32xf32>
    %8 = vector.extract_strided_slice %5 {offsets = [0, 64], sizes = [16, 32], strides = [1, 1]} : vector<16x256xf32> to vector<16x32xf32>
    %9 = arith.mulf %8, %4 : vector<16x32xf32>
    %10 = arith.addf %7, %9 : vector<16x32xf32>
    %11 = vector.extract_strided_slice %5 {offsets = [0, 32], sizes = [16, 32], strides = [1, 1]} : vector<16x256xf32> to vector<16x32xf32>
    %12 = arith.mulf %11, %3 : vector<16x32xf32>
    %13 = vector.extract_strided_slice %5 {offsets = [0, 96], sizes = [16, 32], strides = [1, 1]} : vector<16x256xf32> to vector<16x32xf32>
    %14 = arith.mulf %13, %4 : vector<16x32xf32>
    %15 = arith.addf %12, %14 : vector<16x32xf32>
    %16 = vector.extract_strided_slice %5 {offsets = [0, 128], sizes = [16, 128], strides = [1, 1]} : vector<16x256xf32> to vector<16x128xf32>
    %17 = tpu.transpose %15, [1, 0] : vector<16x32xf32> -> vector<32x16xf32>
    %18 = vector.extract_strided_slice %10 {offsets = [0, 0], sizes = [16, 8], strides = [1, 1]} : vector<16x32xf32> to vector<16x8xf32>
    %19 = vector.extract_strided_slice %17 {offsets = [0, 0], sizes = [8, 16], strides = [1, 1]} : vector<32x16xf32> to vector<8x16xf32>
    %cst_9 = arith.constant dense<0.000000e+00> : vector<16x16xf32>
    %20 = tpu.matmul %18, %19, %cst_9 {dimension_numbers = #tpu.dot_dimension_numbers<[1], [0], [0], [1], [0, 0, 1, 1], [], []>} : vector<16x8xf32>, vector<8x16xf32>, vector<16x16xf32> -> vector<16x16xf32>
    %21 = vector.extract_strided_slice %10 {offsets = [0, 8], sizes = [16, 8], strides = [1, 1]} : vector<16x32xf32> to vector<16x8xf32>
    %22 = vector.extract_strided_slice %17 {offsets = [8, 0], sizes = [8, 16], strides = [1, 1]} : vector<32x16xf32> to vector<8x16xf32>
    %cst_10 = arith.constant dense<0.000000e+00> : vector<16x16xf32>
    %23 = tpu.matmul %21, %22, %cst_10 {dimension_numbers = #tpu.dot_dimension_numbers<[1], [0], [0], [1], [0, 0, 1, 1], [], []>} : vector<16x8xf32>, vector<8x16xf32>, vector<16x16xf32> -> vector<16x16xf32>
    %24 = vector.extract_strided_slice %10 {offsets = [0, 16], sizes = [16, 8], strides = [1, 1]} : vector<16x32xf32> to vector<16x8xf32>
    %25 = vector.extract_strided_slice %17 {offsets = [16, 0], sizes = [8, 16], strides = [1, 1]} : vector<32x16xf32> to vector<8x16xf32>
    %cst_11 = arith.constant dense<0.000000e+00> : vector<16x16xf32>
    %26 = tpu.matmul %24, %25, %cst_11 {dimension_numbers = #tpu.dot_dimension_numbers<[1], [0], [0], [1], [0, 0, 1, 1], [], []>} : vector<16x8xf32>, vector<8x16xf32>, vector<16x16xf32> -> vector<16x16xf32>
    %27 = vector.extract_strided_slice %10 {offsets = [0, 24], sizes = [16, 8], strides = [1, 1]} : vector<16x32xf32> to vector<16x8xf32>
    %28 = vector.extract_strided_slice %17 {offsets = [24, 0], sizes = [8, 16], strides = [1, 1]} : vector<32x16xf32> to vector<8x16xf32>
    %cst_12 = arith.constant dense<0.000000e+00> : vector<16x16xf32>
    %29 = tpu.matmul %27, %28, %cst_12 {dimension_numbers = #tpu.dot_dimension_numbers<[1], [0], [0], [1], [0, 0, 1, 1], [], []>} : vector<16x8xf32>, vector<8x16xf32>, vector<16x16xf32> -> vector<16x16xf32>
    %30 = tpu.concatenate %20, %23, %26, %29 in 0 : vector<16x16xf32>, vector<16x16xf32>, vector<16x16xf32>, vector<16x16xf32> -> vector<64x16xf32>
    %31 = arith.addf %30, %2 : vector<64x16xf32>
    %32 = math.exp %31 : vector<64x16xf32>
    %cst_13 = arith.constant dense<0.000000e+00> : vector<64xf32>
    %33 = vector.multi_reduction <add>, %32, %cst_13 [1] : vector<64x16xf32> to vector<64xf32>
    %34 = vector.shape_cast %33 : vector<64xf32> to vector<64x1xf32>
    %35 = tpu.reciprocal %34 : vector<64x1xf32> -> vector<64x1xf32>
    %36 = vector.broadcast %35 : vector<64x1xf32> to vector<64x16xf32>
    %37 = arith.mulf %32, %36 : vector<64x16xf32>
    %cst_14 = arith.constant 0.000000e+00 : f32
    %38 = vector.broadcast %cst_14 : f32 to vector<16x32xf32>
    %39 = vector.extract_strided_slice %37 {offsets = [0, 0], sizes = [16, 16], strides = [1, 1]} : vector<64x16xf32> to vector<16x16xf32>
    %40 = vector.extract_strided_slice %16 {offsets = [0, 0], sizes = [16, 32], strides = [1, 1]} : vector<16x128xf32> to vector<16x32xf32>
    %cst_15 = arith.constant dense<0.000000e+00> : vector<16x32xf32>
    %41 = tpu.matmul %39, %40, %cst_15 {dimension_numbers = #tpu.dot_dimension_numbers<[1], [0], [0], [1], [0, 0, 1, 1], [], []>} : vector<16x16xf32>, vector<16x32xf32>, vector<16x32xf32> -> vector<16x32xf32>
    %42 = arith.addf %38, %41 : vector<16x32xf32>
    %43 = vector.extract_strided_slice %37 {offsets = [16, 0], sizes = [16, 16], strides = [1, 1]} : vector<64x16xf32> to vector<16x16xf32>
    %44 = vector.extract_strided_slice %16 {offsets = [0, 32], sizes = [16, 32], strides = [1, 1]} : vector<16x128xf32> to vector<16x32xf32>
    %cst_16 = arith.constant dense<0.000000e+00> : vector<16x32xf32>
    %45 = tpu.matmul %43, %44, %cst_16 {dimension_numbers = #tpu.dot_dimension_numbers<[1], [0], [0], [1], [0, 0, 1, 1], [], []>} : vector<16x16xf32>, vector<16x32xf32>, vector<16x32xf32> -> vector<16x32xf32>
    %46 = arith.addf %42, %45 : vector<16x32xf32>
    %47 = vector.extract_strided_slice %37 {offsets = [32, 0], sizes = [16, 16], strides = [1, 1]} : vector<64x16xf32> to vector<16x16xf32>
    %48 = vector.extract_strided_slice %16 {offsets = [0, 64], sizes = [16, 32], strides = [1, 1]} : vector<16x128xf32> to vector<16x32xf32>
    %cst_17 = arith.constant dense<0.000000e+00> : vector<16x32xf32>
    %49 = tpu.matmul %47, %48, %cst_17 {dimension_numbers = #tpu.dot_dimension_numbers<[1], [0], [0], [1], [0, 0, 1, 1], [], []>} : vector<16x16xf32>, vector<16x32xf32>, vector<16x32xf32> -> vector<16x32xf32>
    %50 = arith.addf %46, %49 : vector<16x32xf32>
    %51 = vector.extract_strided_slice %37 {offsets = [48, 0], sizes = [16, 16], strides = [1, 1]} : vector<64x16xf32> to vector<16x16xf32>
    %52 = vector.extract_strided_slice %16 {offsets = [0, 96], sizes = [16, 32], strides = [1, 1]} : vector<16x128xf32> to vector<16x32xf32>
    %cst_18 = arith.constant dense<0.000000e+00> : vector<16x32xf32>
    %53 = tpu.matmul %51, %52, %cst_18 {dimension_numbers = #tpu.dot_dimension_numbers<[1], [0], [0], [1], [0, 0, 1, 1], [], []>} : vector<16x16xf32>, vector<16x32xf32>, vector<16x32xf32> -> vector<16x32xf32>
    %54 = arith.addf %50, %53 : vector<16x32xf32>
    %c0_19 = arith.constant 0 : index
    %c0_20 = arith.constant 0 : index
    %55 = vector.load %arg5[%c0_19, %c0_20] : memref<16x32xf32, #tpu.memory_space<vmem>>, vector<16x32xf32>
    tpu.vector_store %arg5[%c0_19, %c0_20], %54 {strides = array<i32>} : memref<16x32xf32, #tpu.memory_space<vmem>>, vector<16x32xf32>,
    return
  }
}

</mosaic_0001>

<bundles_post_ra>
// kernel: tpu_custom_call.1
= control target key start
LH: loop header
LB: loop body
LE: loop exit
PB: predicated region body
PF: predicated region fallthrough
CT: control target
= control target key end

     0   :  { %10 = vsyncpa [#allocation3], 0  ;;  %s1423_s0 = inlined_call_operand.vmem [shape: f32[16,32], index: 0, kind: input, shape index: {}]   ;;  %s1424_s1 = inlined_call_operand.vmem [shape: f32[32,256], index: 1, kind: input, shape index: {}]   ;;  %s1425_s2 = inlined_call_operand.vmem [shape: f32[64,16], index: 2, kind: input, shape index: {}]   ;;  %s1426_s3 = inlined_call_operand.hbm [shape: f32[16,32], index: 3, kind: input, shape index: {}]   ;;  %s1427_s4 = inlined_call_operand.hbm [shape: f32[16,32], index: 4, kind: input, shape index: {}]   ;;  %s1428_s5 = inlined_call_operand.hbm [shape: f32[16,32], index: 5, kind: output, shape index: {}]  }
   0x1   :  { %11 = vsyncpa [#allocation6], 0 }
   0x2   :  { %12 = vsyncpa [#allocation4], 0  ;;  %s1230_s18 = smov [#allocation2]  }
   0x3   :  { %s24_s19 = sshll.u32 %s1230_s18, 4  ;;  %s25_s19 = int_to_ptr.vmem [resolvable:$true] %s24_s19 }
   0x4   :  { %s1172_s20 = scalar_lea.vmem %s25_s19, 256  ;;  %p1177_p1 = scmp.lt.s32.totalorder %s25_s19, %s25_s19 }
   0x5   :  { %p1173_p0 = scmp.ne.s32.totalorder %s25_s19, %s1172_s20  ;;  %p1178_p2 = scmp.lt.s32.totalorder %s1172_s20, %s1172_s20 }
   0x7   :  { %p1179_p3 = por %p1178_p2, %p1177_p1 }
   0x9   :  { %p1180_p4 = pnand %p1179_p3, %p1173_p0 }
   0xb   :  { %1183 = shalt.err (!%p1180_p4)
}
   0xc   :  { %s1231_s21 = smov 128   ;;  %s1232_s22 = smov 8  }
   0xd   :  { %30 = dma.hbm_to_vmem [thread:$0]  %s1426_s3, 256, %s25_s19, [#allocation3], %s1231_s21, %s1231_s21, %s1232_s22  }
   0xe   :  { %s1233_s25 = smov [#allocation5]  }
   0xf   :  { %s36_s26 = sshll.u32 %s1233_s25, 4  ;;  %s37_s26 = int_to_ptr.vmem [resolvable:$true] %s36_s26 }
  0x10   :  { %s1192_s27 = scalar_lea.vmem %s37_s26, 256  ;;  %p1197_p6 = scmp.lt.s32.totalorder %s37_s26, %s37_s26 }
  0x11   :  { %p1193_p5 = scmp.ne.s32.totalorder %s37_s26, %s1192_s27  ;;  %p1198_p7 = scmp.lt.s32.totalorder %s1192_s27, %s1192_s27 }
  0x13   :  { %p1199_p8 = por %p1198_p7, %p1197_p6 }
  0x15   :  { %p1200_p9 = pnand %p1199_p8, %p1193_p5 }
  0x17   :  { %1203 = shalt.err (!%p1200_p9)
}
  0x18   :  { %42 = dma.hbm_to_vmem [thread:$0]  %s1427_s4, 256, %s37_s26, [#allocation6], %s1231_s21, %s1231_s21, %s1232_s22  }
  0x19   :  { %1224 = dma.done.wait [#allocation3], 256  }
  0x1a   :  { %1225 = vsyncadd [#allocation3], 4294967040 }
  0x1b   :  { %1226 = dma.done.wait [#allocation6], 256  }
  0x1c   :  { %1227 = vsyncadd [#allocation6], 4294967040  ;;  %v1234_v0 = vmov 0.0   ;;  %v58_v1 = vld [vmem:[%s1424_s1 + $0x38] sm:$0xff]  ;;  %v57_v2 = vld [vmem:[%s1424_s1 + $0x30] sm:$0xff]  ;;  %s1235_s17 = smov 96  }
  0x1d   :  { %142 = vmatprep.mubr.f32.mxu0 %v1234_v0  ;;  %v56_v3 = vld [vmem:[%s1424_s1 + $0x28] sm:$0xff]  ;;  %102 = vmatprep.subr.mxu0 %v58_v1  ;;  %v55_v4 = vld [vmem:[%s1424_s1 + $0x20] sm:$0xff]  ;;  %v54_v5 = vld [vmem:[%s1424_s1 + $0x18] sm:$0xff]  ;;  %s1236_s20 = smov 64   ;;  %vm71_vm0 = vcmask 261120   ;;  %s1237_s26 = smov 32  }
  0x1e   :  { %103 = vmatpush1.msra.mxu0 %v57_v2  ;;  %v53_v6 = vld [vmem:[%s1424_s1 + $0x10] sm:$0xff]  ;;  %v70_v7 = vld [vmem:[#allocation5 + $0x8] sm:$0xff]  ;;  %v52_v8 = vld [vmem:[%s1424_s1 + $0x8] sm:$0xff]  ;;  %vm211_vm1 = vcmask 64512   ;;  %s1239_s27 = smov 120   ;;  %s1240_s28 = smov 80  }
  0x1f   :  { %104 = vmatprep.subr.mxu0 %v56_v3  ;;  %189 = vrot.lane.b32.xlu0 %v70_v7, %s1235_s17  ;;  %v69_v9 = vld [vmem:[#allocation5] sm:$0xff]  ;;  %v51_v10 = vld [vmem:[%s1424_s1] sm:$0xff]  ;;  %v68_v12 = vld [vmem:[#allocation2 + $0x8] sm:$0xff]  ;;  %s1241_s29 = smov 72   ;;  %s1242_s3 = smov 112   ;;  %vm594_vm2 = vcmask 130048  }
  0x20   :  { %105 = vmatpush1.msra.mxu0 %v55_v4  ;;  %159 = vrot.lane.b32.xlu1 %v69_v9, %s1236_s20  ;;  %v49_v11 = vld [vmem:[%s1423_s0] sm:$0xff]  ;;  %v50_v13 = vld [vmem:[%s1423_s0 + $0x8] sm:$0xff]  ;;  %s1238_s0 = smov 88   ;;  %s1243_s30 = smov 104   ;;  %v61_v3 = vld [vmem:[%s1425_s2 + $0x10] sm:$0xff] }
  0x21   :  { %106 = vmatprep.subr.mxu0 %v54_v5  ;;  %v67_v14 = vld [vmem:[#allocation2] sm:$0xff]  ;;  %v60_v59 = vld [vmem:[%s1425_s2 + $0x8] sm:$0xff] }
  0x22   :  { %107 = vmatpush1.msra.mxu0 %v53_v6  ;;  %v59_v62 = vld [vmem:[%s1425_s2] sm:$0xff] }
  0x23   :  { %108 = vmatprep.subr.mxu0 %v52_v8  ;;  %187 = vrot.lane.b32.xlu0 %v69_v9, %s1235_s17  ;;  %v64_v9 = vld [vmem:[%s1425_s2 + $0x28] sm:$0xff] }
  0x24   :  { %109 = vmatpush1.msra.mxu0 %v51_v10  ;;  %161 = vrot.lane.b32.xlu1 %v70_v7, %s1236_s20 }
  0x25   :  { %1003 = vmatmul.mubr.msk.f32.vlgmr.msra.gmra.mxu0 %vm71_vm0, %v49_v11 }
  0x26   :  { %148 = vmatprep.mubr.f32.mxu0 %v1234_v0  ;;  %v62_v0 = vld [vmem:[%s1425_s2 + $0x18] sm:$0xff] }
  0x27   :  { %181 = vrot.lane.b32.xlu0 %v68_v12, %s1237_s26 }
  0x29   :  { %1004 = vmatmul.mubr.msk.f32.gmra.mxu0 %vm71_vm0, %v50_v13  ;;  %v63_v13 = vld [vmem:[%s1425_s2 + $0x20] sm:$0xff] }
  0x2b   :  { %179 = vrot.lane.b32.xlu0 %v67_v14, %s1237_s26 }
  0x91   :  { %v190_v18 = vpop.permute.xlu0 %189 }
  0x92   :  { %v160_v15 = vpop.permute.xlu1 %159 }
  0x95   :  { %v188_v22 = vpop.permute.xlu0 %187 }
  0x96   :  { %v162_v24 = vpop.permute.xlu1 %161 }
  0x99   :  { %v182_v26 = vpop.permute.xlu0 %181 }
  0x9d   :  { %v180_v27 = vpop.permute.xlu0 %179 }
  0xe5   :  { %v144_v16 = vpop.f32.mrf.mxu0 }
  0xe6   :  { %v165_v17 = vmul.f32 %v160_v15, %v144_v16  ;;  %v193_v23 = vmul.f32 %v188_v22, %v144_v16  ;;  %v155_v28 = vmul.f32 %v144_v16, %v67_v14  ;;  %v185_v32 = vmul.f32 %v180_v27, %v144_v16  ;;  %v66_v16 = vld [vmem:[%s1425_s2 + $0x38] sm:$0xff] }
  0xe7   :  { %v1325_v19 = vpop.f32.mrf.mxu0 }
  0xe8   :  { %169 = vrot.lane.b32.xlu0 %v165_v17, %s1236_s20 }
  0xe9   :  { %v150_v20 = vpop.f32.mrf.mxu0 }
  0xea   :  { %v194_v21 = vmul.f32 %v190_v18, %v150_v20  ;;  %v166_v25 = vmul.f32 %v162_v24, %v150_v20  ;;  %v186_v35 = vmul.f32 %v182_v26, %v150_v20  ;;  %v156_v38 = vmul.f32 %v150_v20, %v68_v12 }
  0xeb   :  { %v1334_v40 = vpop.f32.mrf.mxu0 }
  0xec   :  { %199 = vrot.lane.b32.xlu1 %v194_v21, %s1236_s20  ;;  %v65_v21 = vld [vmem:[%s1425_s2 + $0x30] sm:$0xff]  ;;  %s1244_s2 = smov [#allocation7]  }
  0xed   :  { %s990_s23 = sshll.u32 %s1244_s2, 4  ;;  %s991_s23 = int_to_ptr.vmem [resolvable:$true] %s990_s23 }
  0xee   :  { %s1204_s24 = scalar_lea.vmem %s991_s23, 256  ;;  %p1209_p11 = scmp.lt.s32.totalorder %s991_s23, %s991_s23 }
  0xef   :  { %p1205_p10 = scmp.ne.s32.totalorder %s991_s23, %s1204_s24  ;;  %p1210_p12 = scmp.lt.s32.totalorder %s1204_s24, %s1204_s24 }
  0xf0   :  { %197 = vrot.lane.b32.xlu1 %v193_v23, %s1236_s20 }
  0xf1   :  { %p1211_p13 = por %p1210_p12, %p1209_p11 }
  0xf3   :  { %p1212_p0 = pnand %p1211_p13, %p1205_p10 }
  0xf4   :  { %171 = vrot.lane.b32.xlu1 %v166_v25, %s1236_s20 }
 0x15a   :  { %v170_v29 = vpop.permute.xlu0 %169 }
 0x15b   :  { %v175_v30 = vadd.f32 %v170_v29, %v155_v28 }
 0x15d   :  { %1065 = vmatprep.mubr.msk.f32.mxu1 %vm211_vm1, %v175_v30 }
 0x15e   :  { %v200_v31 = vpop.permute.xlu1 %199 }
 0x15f   :  { %v204_v36 = vadd.f32 %v200_v31, %v186_v35 }
 0x162   :  { %v198_v33 = vpop.permute.xlu1 %197 }
 0x163   :  { %v203_v34 = vadd.f32 %v198_v33, %v185_v32 }
 0x165   :  { %207 = vrot.lane.b32.xlu0 %v203_v34, %s1235_s17  ;;  %301 = vrot.lane.b32.xlu1 %v203_v34, %s1238_s0 }
 0x166   :  { %v172_v37 = vpop.permute.xlu1 %171 }
 0x167   :  { %v176_v39 = vadd.f32 %v172_v37, %v156_v38 }
 0x169   :  { %209 = vrot.lane.b32.xlu0 %v204_v36, %s1235_s17  ;;  %297 = vrot.lane.b32.xlu1 %v175_v30, %s1239_s27 }
 0x16d   :  { %392 = vrot.lane.b32.xlu0 %v203_v34, %s1240_s28  ;;  %303 = vrot.lane.b32.xlu1 %v204_v36, %s1238_s0 }
 0x171   :  { %394 = vrot.lane.b32.xlu0 %v204_v36, %s1240_s28  ;;  %483 = vrot.lane.b32.xlu1 %v203_v34, %s1241_s29 }
 0x175   :  { %485 = vrot.lane.b32.xlu1 %v204_v36, %s1241_s29  ;;  %299 = vrot.lane.b32.xlu0 %v176_v39, %s1239_s27 }
 0x179   :  { %390 = vrot.lane.b32.xlu1 %v176_v39, %s1242_s3  ;;  %388 = vrot.lane.b32.xlu0 %v175_v30, %s1242_s3 }
 0x17d   :  { %481 = vrot.lane.b32.xlu1 %v176_v39, %s1243_s30  ;;  %479 = vrot.lane.b32.xlu0 %v175_v30, %s1243_s30 }
 0x181   :  { %637 = vrot.lane.b32.xlu0 %v1325_v19, %s1235_s17  ;;  %639 = vrot.lane.b32.xlu1 %v1334_v40, %s1235_s17 }
 0x185   :  { %807 = vrot.lane.b32.xlu1 %v1334_v40, %s1236_s20 }
 0x189   :  { %805 = vrot.lane.b32.xlu1 %v1325_v19, %s1236_s20 }
 0x1d7   :  { %v208_v41 = vpop.permute.xlu0 %207  ;;  %v302_v42 = vpop.permute.xlu1 %301 }
 0x1db   :  { %v210_v43 = vpop.permute.xlu0 %209  ;;  %v298_v44 = vpop.permute.xlu1 %297 }
 0x1dc   :  { %1061 = vmatprep.subr.msk.mxu1 %vm211_vm1, %v210_v43  ;;  %1072 = vmatprep.mubr.msk.f32.mxu0 %vm211_vm1, %v298_v44 }
 0x1dd   :  { %1062 = vmatpush3.xpose.msk.msra.mxu1 %vm211_vm1, %v210_v43 }
 0x1de   :  { %1063 = vmatprep.subr.msk.mxu1 %vm211_vm1, %v208_v41 }
 0x1df   :  { %v393_v45 = vpop.permute.xlu0 %392  ;;  %v304_v46 = vpop.permute.xlu1 %303 }
 0x1e0   :  { %1068 = vmatprep.subr.msk.mxu0 %vm211_vm1, %v304_v46 }
 0x1e1   :  { %1064 = vmatpush3.xpose.msk.msra.mxu1 %vm211_vm1, %v208_v41  ;;  %1069 = vmatpush3.xpose.msk.msra.mxu0 %vm211_vm1, %v304_v46 }
 0x1e2   :  { %1070 = vmatprep.subr.msk.mxu0 %vm211_vm1, %v302_v42 }
 0x1e3   :  { %v395_v47 = vpop.permute.xlu0 %394  ;;  %v484_v48 = vpop.permute.xlu1 %483 }
 0x1e4   :  { %1066 = vmatmul.mubr.msk.f32.vlgmr.msra.gmra.mxu1 %vm211_vm1, %v176_v39  ;;  %1075 = vmatprep.subr.msk.mxu1 %vm211_vm1, %v395_v47 }
 0x1e5   :  { %1071 = vmatpush3.xpose.msk.msra.mxu0 %vm211_vm1, %v302_v42  ;;  %1076 = vmatpush3.xpose.msk.msra.mxu1 %vm211_vm1, %v395_v47 }
 0x1e6   :  { %1077 = vmatprep.subr.msk.mxu1 %vm211_vm1, %v393_v45 }
 0x1e7   :  { %v486_v49 = vpop.permute.xlu1 %485  ;;  %v300_v50 = vpop.permute.xlu0 %299 }
 0x1e8   :  { %1073 = vmatmul.mubr.msk.f32.vlgmr.msra.gmra.mxu0 %vm211_vm1, %v300_v50  ;;  %1082 = vmatprep.subr.msk.mxu0 %vm211_vm1, %v486_v49 }
 0x1e9   :  { %1078 = vmatpush3.xpose.msk.msra.mxu1 %vm211_vm1, %v393_v45  ;;  %1083 = vmatpush3.xpose.msk.msra.mxu0 %vm211_vm1, %v486_v49 }
 0x1ea   :  { %1084 = vmatprep.subr.msk.mxu0 %vm211_vm1, %v484_v48 }
 0x1eb   :  { %v391_v51 = vpop.permute.xlu1 %390  ;;  %v389_v52 = vpop.permute.xlu0 %388 }
 0x1ec   :  { %1079 = vmatprep.mubr.msk.f32.mxu1 %vm211_vm1, %v389_v52 }
 0x1ed   :  { %1080 = vmatmul.mubr.msk.f32.vlgmr.msra.gmra.mxu1 %vm211_vm1, %v391_v51  ;;  %1085 = vmatpush3.xpose.msk.msra.mxu0 %vm211_vm1, %v484_v48 }
 0x1ef   :  { %v482_v53 = vpop.permute.xlu1 %481  ;;  %v480_v54 = vpop.permute.xlu0 %479 }
 0x1f0   :  { %1086 = vmatprep.mubr.msk.f32.mxu0 %vm211_vm1, %v480_v54 }
 0x1f1   :  { %1087 = vmatmul.mubr.msk.f32.vlgmr.msra.gmra.mxu0 %vm211_vm1, %v482_v53 }
 0x1f3   :  { %v640_v55 = vpop.permute.xlu1 %639  ;;  %v638_v56 = vpop.permute.xlu0 %637 }
 0x1f4   :  { %1089 = vmatprep.subr.mxu1 %v640_v55 }
 0x1f5   :  { %1090 = vmatpush3.msra.mxu1 %v640_v55 }
 0x1f6   :  { %1091 = vmatprep.subr.mxu1 %v638_v56 }
 0x1f7   :  { %1092 = vmatpush3.msra.mxu1 %v638_v56  ;;  %v808_v57 = vpop.permute.xlu1 %807 }
 0x1f8   :  { %1096 = vmatprep.subr.mxu1 %v1334_v40  ;;  %1103 = vmatprep.subr.mxu0 %v808_v57 }
 0x1f9   :  { %1104 = vmatpush3.msra.mxu0 %v808_v57 }
 0x1fb   :  { %v806_v58 = vpop.permute.xlu1 %805 }
 0x1fc   :  { %1105 = vmatprep.subr.mxu0 %v806_v58 }
 0x1fd   :  { %1106 = vmatpush3.msra.mxu0 %v806_v58 }
 0x2a4   :  { %v1067_v60 = vpop.f32.mrf.mxu1 }
 0x2a5   :  { %v571_v61 = vadd.f32 %v1067_v60, %v60_v59 }
 0x2a6   :  { %v288_v63 = vpop.f32.mrf.mxu1 }
 0x2a7   :  { %v580_v1 = vmul.f32 1.442695, %v571_v61  ;;  %v570_v4 = vadd.f32 %v288_v63, %v59_v62 }
 0x2a8   :  { %v1074_v2 = vpop.f32.mrf.mxu0 }
 0x2a9   :  { %1132 = vpow2.f32 %v580_v1  ;;  %v573_v5 = vadd.f32 %v1074_v2, %v62_v0  ;;  %v578_v10 = vmul.f32 1.442695, %v570_v4 }
 0x2aa   :  { %v379_v6 = vpop.f32.mrf.mxu0 }
 0x2ab   :  { %v584_v7 = vmul.f32 1.442695, %v573_v5  ;;  %v572_v8 = vadd.f32 %v379_v6, %v61_v3 }
 0x2ad   :  { %1134 = vpow2.f32 %v584_v7  ;;  %v582_v11 = vmul.f32 1.442695, %v572_v8  ;;  %v1081_v12 = vpop.f32.mrf.mxu1 }
 0x2ae   :  { %v575_v14 = vadd.f32 %v1081_v12, %v64_v9 }
 0x2af   :  { %1136 = vpow2.f32 %v582_v11  ;;  %v470_v15 = vpop.f32.mrf.mxu1 }
 0x2b0   :  { %v574_v17 = vadd.f32 %v470_v15, %v63_v13  ;;  %1138 = vpow2.f32 %v578_v10  ;;  %v588_v18 = vmul.f32 1.442695, %v575_v14 }
 0x2b1   :  { %v1088_v20 = vpop.f32.mrf.mxu0 }
 0x2b2   :  { %v586_v22 = vmul.f32 1.442695, %v574_v17  ;;  %v577_v23 = vadd.f32 %v1088_v20, %v66_v16 }
 0x2b3   :  { %v561_v24 = vpop.f32.mrf.mxu0 }
 0x2b4   :  { %1140 = vpow2.f32 %v586_v22  ;;  %v576_v25 = vadd.f32 %v561_v24, %v65_v21  ;;  %v592_v26 = vmul.f32 1.442695, %v577_v23 }
 0x2b5   :  { %1142 = vpow2.f32 %v588_v18 }
 0x2b6   :  { %v1133_v27 = vpop.eup %1132  ;;  %v590_v28 = vmul.f32 1.442695, %v576_v25 }
 0x2b7   :  { %v598_v29 = vsel %vm594_vm2, %v1133_v27, 0.0 }
 0x2b8   :  { %1144 = vpow2.f32 %v590_v28  ;;  %599 = vadd.xlane.f32.xlu0 %v598_v29 }
 0x2b9   :  { %1146 = vpow2.f32 %v592_v26 }
 0x2ba   :  { %v1135_v30 = vpop.eup %1134 }
 0x2bb   :  { %v604_v31 = vsel %vm594_vm2, %v1135_v30, 0.0 }
 0x2bc   :  { %v1137_v32 = vpop.eup %1136  ;;  %605 = vadd.xlane.f32.xlu1 %v604_v31 }
 0x2bd   :  { %v601_v33 = vsel %vm594_vm2, %v1137_v32, 0.0  ;;  %v1139_v34 = vpop.eup %1138 }
 0x2be   :  { %602 = vadd.xlane.f32.xlu0 %v601_v33  ;;  %v595_v36 = vsel %vm594_vm2, %v1139_v34, 0.0 }
 0x2c1   :  { %v1141_v35 = vpop.eup %1140 }
 0x2c2   :  { %v1143_v37 = vpop.eup %1142  ;;  %596 = vadd.xlane.f32.xlu0 %v595_v36  ;;  %v607_v38 = vsel %vm594_vm2, %v1141_v35, 0.0 }
 0x2c3   :  { %608 = vadd.xlane.f32.xlu1 %v607_v38  ;;  %v610_v41 = vsel %vm594_vm2, %v1143_v37, 0.0 }
 0x2c5   :  { %v1145_v39 = vpop.eup %1144 }
 0x2c6   :  { %v1147_v42 = vpop.eup %1146  ;;  %611 = vadd.xlane.f32.xlu0 %v610_v41  ;;  %v613_v43 = vsel %vm594_vm2, %v1145_v39, 0.0 }
 0x2c7   :  { %614 = vadd.xlane.f32.xlu1 %v613_v43  ;;  %v616_v44 = vsel %vm594_vm2, %v1147_v42, 0.0 }
 0x2ca   :  { %617 = vadd.xlane.f32.xlu0 %v616_v44 }
 0x2d8   :  { %894 = vrot.lane.b32.xlu1 %v1325_v19, %s1237_s26 }
 0x2e0   :  { %896 = vrot.lane.b32.xlu0 %v1334_v40, %s1237_s26 }
 0x341   :  { %v600_v45 = vpop.xlane.xlu0 %599 }
 0x345   :  { %v606_v46 = vpop.xlane.xlu1 %605 }
 0x346   :  { %1148 = vrcp.f32 %v606_v46 }
 0x347   :  { %v603_v47 = vpop.xlane.xlu0 %602 }
 0x348   :  { %1150 = vrcp.f32 %v603_v47 }
 0x349   :  { %1152 = vrcp.f32 %v600_v45 }
 0x34b   :  { %v597_v48 = vpop.xlane.xlu0 %596 }
 0x34c   :  { %1154 = vrcp.f32 %v597_v48  ;;  %v609_v49 = vpop.xlane.xlu1 %608 }
 0x34d   :  { %1156 = vrcp.f32 %v609_v49 }
 0x34f   :  { %v612_v50 = vpop.xlane.xlu0 %611 }
 0x350   :  { %1158 = vrcp.f32 %v612_v50  ;;  %v615_v51 = vpop.xlane.xlu1 %614 }
 0x351   :  { %1160 = vrcp.f32 %v615_v51 }
 0x353   :  { %v618_v52 = vpop.xlane.xlu0 %617  ;;  %v1149_v53 = vpop.eup %1148 }
 0x354   :  { %1162 = vrcp.f32 %v618_v52  ;;  %v630_v56 = vmul.f32 %v1149_v53, %v1135_v30  ;;  %v895_v2 = vpop.permute.xlu1 %894 }
 0x355   :  { %v1151_v54 = vpop.eup %1150 }
 0x356   :  { %v629_v55 = vmul.f32 %v1151_v54, %v1137_v32  ;;  %v1153_v57 = vpop.eup %1152 }
 0x357   :  { %v628_v61 = vmul.f32 %v1153_v57, %v1133_v27  ;;  %v897_v63 = vpop.permute.xlu0 %896 }
 0x358   :  { %1093 = vmatprep.mubr.msk.f32.mxu1 %vm594_vm2, %v629_v55 }
 0x359   :  { %v1155_v58 = vpop.eup %1154  ;;  %1094 = vmatmul.mubr.msk.f32.vlgmr.msra.gmra.mxu1 %vm594_vm2, %v630_v56 }
 0x35a   :  { %v1157_v59 = vpop.eup %1156  ;;  %1097 = vmatpush3.msra.mxu1 %v1334_v40  ;;  %v627_v60 = vmul.f32 %v1155_v58, %v1139_v34 }
 0x35b   :  { %1098 = vmatprep.subr.mxu1 %v1325_v19  ;;  %v631_v62 = vmul.f32 %v1157_v59, %v1141_v35 }
 0x35c   :  { %1099 = vmatpush3.msra.mxu1 %v1325_v19  ;;  %1100 = vmatprep.mubr.msk.f32.mxu1 %vm594_vm2, %v627_v60 }
 0x35d   :  { %v1159_v0 = vpop.eup %1158  ;;  %1110 = vmatprep.subr.mxu1 %v897_v63  ;;  %1101 = vmatmul.mubr.msk.f32.vlgmr.msra.gmra.mxu1 %vm594_vm2, %v628_v61 }
 0x35e   :  { %v1161_v1 = vpop.eup %1160  ;;  %1107 = vmatprep.mubr.msk.f32.mxu0 %vm594_vm2, %v631_v62  ;;  %1111 = vmatpush3.msra.mxu1 %v897_v63  ;;  %v632_v40 = vmul.f32 %v1159_v0, %v1143_v37 }
 0x35f   :  { %1112 = vmatprep.subr.mxu1 %v895_v2  ;;  %v633_v3 = vmul.f32 %v1161_v1, %v1145_v39 }
 0x360   :  { %1113 = vmatpush3.msra.mxu1 %v895_v2  ;;  %1108 = vmatmul.mubr.msk.f32.vlgmr.msra.gmra.mxu0 %vm594_vm2, %v632_v40 }
 0x361   :  { %v1163_v4 = vpop.eup %1162  ;;  %1114 = vmatprep.mubr.msk.f32.mxu1 %vm594_vm2, %v633_v3 }
 0x362   :  { %v634_v19 = vmul.f32 %v1163_v4, %v1147_v42 }
 0x364   :  { %1115 = vmatmul.mubr.msk.f32.vlgmr.msra.gmra.mxu1 %vm594_vm2, %v634_v19 }
 0x419   :  { %v1095_v5 = vpop.f32.mrf.mxu1 }
 0x41b   :  { %v715_v6 = vpop.f32.mrf.mxu1 }
 0x41d   :  { %v1102_v7 = vpop.f32.mrf.mxu1 }
 0x41e   :  { %v802_v8 = vadd.f32 %v1102_v7, %v1095_v5 }
 0x41f   :  { %v796_v9 = vpop.f32.mrf.mxu1 }
 0x420   :  { %v1109_v10 = vpop.f32.mrf.mxu0  ;;  %v797_v11 = vadd.f32 %v796_v9, %v715_v6 }
 0x421   :  { %v893_v13 = vadd.f32 %v1109_v10, %v802_v8 }
 0x422   :  { %v883_v12 = vpop.f32.mrf.mxu0 }
 0x423   :  { %v892_v15 = vadd.f32 %v883_v12, %v797_v11 }
 0x424   :  { %v1116_v14 = vpop.f32.mrf.mxu1 }
 0x425   :  { %v982_v16 = vadd.f32 %v1116_v14, %v893_v13 }
 0x426   :  { %v972_v17 = vpop.f32.mrf.mxu1 }
 0x427   :  { %984 = vst.msk [vmem:[#allocation7 + $0x8] sm:$0xff] %vm71_vm0, %v982_v16  ;;  %v981_v18 = vadd.f32 %v972_v17, %v892_v15 }
 0x429   :  { %983 = vst.msk [vmem:[#allocation7] sm:$0xff] %vm71_vm0, %v981_v18 }
 0x42a   :  { %1215 = shalt.err (!%p1212_p0)
}
 0x42b   :  { %996 = dma.vmem_to_hbm [thread:$0]  %s991_s23, 256, %s1428_s5, [#allocation4], %s1231_s21, %s1231_s21, %s1232_s22  }
 0x42c   :  { %1228 = dma.done.wait [#allocation4], 256  }
 0x42d   :  { %1229 = vsyncadd [#allocation4], 4294967040 }
 0x42e   :  { %1000 = vsyncpa [#allocation3], 1 }
 0x42f   :  { %1001 = vsyncpa [#allocation6], 1 }
 0x430   :  { %1002 = vsyncpa [#allocation4], 1 }

</bundles_post_ra>
